<compile_context>
chip_gen: v5e
topology: v5e:2x2
jax: 0.10.0
libtpu: 0.0.40
codegen_flags: <defaults>
</compile_context>

<pallas_src>
import jax
import jax.numpy as jnp
from jax.experimental import pallas as pl
from jax.experimental.pallas import tpu as pltpu


def _exp_kernel(x_ref, o_ref):
    # Elementwise exp on the current VMEM tile (EUP transcendental slot);
    # kernel is HBM-bandwidth bound, compute side is irrelevant.
    o_ref[...] = jnp.exp(x_ref[...])


def _sublane_multiple(dtype) -> int:
    # Sub-32-bit dtypes pack along sublanes: 8 rows for 4B, 16 for 2B, 32 for 1B.
    itemsize = jnp.dtype(dtype).itemsize
    return max(8, 32 // max(1, itemsize))


def _launch(x2d: jax.Array, *, target_block_bytes: int) -> jax.Array:
    rows, cols = x2d.shape
    itemsize = jnp.dtype(x2d.dtype).itemsize
    sl = _sublane_multiple(x2d.dtype)
    bytes_per_row = cols * itemsize

    # Pick block rows so one block is ~target_block_bytes.
    rows_target = max(1, target_block_bytes // bytes_per_row)
    if rows_target >= rows:
        tile_rows = rows  # single block along rows (full extent is always legal)
    else:
        tile_rows = max(sl, (rows_target // sl) * sl)
    grid_rows = pl.cdiv(rows, tile_rows)

    # Prefer >= 4 grid steps while blocks stay >= ~512 KiB: lets v7x's two
    # TensorCores both work on the "parallel" axis; harmless on v5e/v6e.
    if grid_rows < 4:
        alt_rows = ((pl.cdiv(rows, 4) + sl - 1) // sl) * sl
        if alt_rows >= sl and alt_rows * bytes_per_row >= (512 << 10):
            tile_rows = min(tile_rows, alt_rows)
            grid_rows = pl.cdiv(rows, tile_rows)

    return pl.pallas_call(
        _exp_kernel,
        out_shape=jax.ShapeDtypeStruct((rows, cols), x2d.dtype),
        grid_spec=pltpu.PrefetchScalarGridSpec(
            num_scalar_prefetch=0,
            grid=(grid_rows,),
            in_specs=[pl.BlockSpec((tile_rows, cols), lambda i: (i, 0))],
            out_specs=pl.BlockSpec((tile_rows, cols), lambda i: (i, 0)),
        ),
        compiler_params=pltpu.CompilerParams(
            dimension_semantics=("parallel",)),
    )(x2d)


def exp_activation(x: jax.Array, *,
                   target_block_bytes: int = 2 << 20,
                   small_input_bytes: int = 1 << 20) -> jax.Array:
    """Elementwise exp via a Pallas TPU kernel (ExpActivation.forward)."""
    total = int(x.size)
    itemsize = jnp.dtype(x.dtype).itemsize

    # Tiny-input fast path: pallas_call fixed cost + wrapper would dominate.
    if total * itemsize < small_input_bytes:
        return jnp.exp(x)

    lanes = 128
    sl = _sublane_multiple(x.dtype)

    if (x.ndim >= 2 and x.shape[-1] % lanes == 0
            and x.shape[-1] * itemsize * sl <= target_block_bytes):
        # Zero-copy: keep the native lane-dense (multiple-of-128) last dim.
        x2d = x.reshape(-1, x.shape[-1])
        return _launch(x2d, target_block_bytes=target_block_bytes).reshape(x.shape)

    if total % lanes == 0:
        # Zero-copy flat view, 128 lanes wide.
        x2d = x.reshape(-1, lanes)
        return _launch(x2d, target_block_bytes=target_block_bytes).reshape(x.shape)

    # Rare fallback (total not a multiple of 128): one pad copy + one slice.
    pad = (-total) % lanes
    x_flat = jnp.concatenate([x.reshape(-1), jnp.zeros((pad,), dtype=x.dtype)])
    out2d = _launch(x_flat.reshape(-1, lanes),
                    target_block_bytes=target_block_bytes)
    return out2d.reshape(-1)[:total].reshape(x.shape)


if __name__ == "__main__":
    key = jax.random.PRNGKey(0)
    k0, k1, k2, k3 = jax.random.split(key, 4)

    # 1) Small shape typical of the module's usage -> tiny-input fast path.
    x_small = jax.random.normal(k0, (2, 4, 16, 16), dtype=jnp.float32)
    y_small = jax.block_until_ready(exp_activation(x_small))
    assert y_small.shape == x_small.shape and y_small.dtype == x_small.dtype
    assert jnp.allclose(y_small, jnp.exp(x_small), rtol=1e-6, atol=1e-6)

    # 2) (batch, hidden) slab big enough to exercise the Pallas kernel path
    #    (zero-copy reshape, 4-step parallel grid).
    x_mid = jax.random.normal(k1, (512, 1024), dtype=jnp.float32)
    y_mid = jax.block_until_ready(exp_activation(x_mid))
    assert y_mid.shape == x_mid.shape and y_mid.dtype == x_mid.dtype
    assert jnp.allclose(y_mid, jnp.exp(x_mid), rtol=1e-6, atol=1e-6)

    # 3) Ragged total (not a multiple of 128) -> pad fallback path.
    x_odd = jax.random.normal(k2, (513, 1023), dtype=jnp.float32)
    y_odd = jax.block_until_ready(exp_activation(x_odd))
    assert y_odd.shape == x_odd.shape and y_odd.dtype == x_odd.dtype
    assert jnp.allclose(y_odd, jnp.exp(x_odd), rtol=1e-6, atol=1e-6)

    # 4) bf16 input -> dtype-aware (16-row) sublane rounding.
    x_bf = jax.random.normal(k3, (1024, 1024), dtype=jnp.bfloat16)
    y_bf = jax.block_until_ready(exp_activation(x_bf))
    assert y_bf.shape == x_bf.shape and y_bf.dtype == x_bf.dtype
    assert jnp.allclose(y_bf.astype(jnp.float32),
                        jnp.exp(x_bf).astype(jnp.float32),
                        rtol=5e-2, atol=1e-2)

    print("KERNEL_OK")
</pallas_src>

<mosaic_0001>
module attributes {stable_mosaic.version = 11 : i64} {
  func.func @_exp_kernel(%arg0: i32, %arg1: memref<128x1024xf32, #tpu.memory_space<vmem>>, %arg2: memref<128x1024xf32, #tpu.memory_space<vmem>>) attributes {dimension_semantics = [#tpu.dimension_semantics<parallel>], iteration_bounds = array<i64: 4>, scalar_prefetch = 0 : i64, scratch_operands = 0 : i64, tpu.core_type = #tpu.core_type<tc>, window_params = [{transform_indices = @transform_0, window_bounds = array<i64: 128, 1024>}, {transform_indices = @transform_1, window_bounds = array<i64: 128, 1024>}]} {
    %c0 = arith.constant 0 : index
    %c0_0 = arith.constant 0 : index
    %0 = vector.load %arg1[%c0, %c0_0] : memref<128x1024xf32, #tpu.memory_space<vmem>>, vector<128x1024xf32>
    %1 = math.exp %0 : vector<128x1024xf32>
    %c0_1 = arith.constant 0 : index
    %c0_2 = arith.constant 0 : index
    %2 = vector.load %arg2[%c0_1, %c0_2] : memref<128x1024xf32, #tpu.memory_space<vmem>>, vector<128x1024xf32>
    tpu.vector_store %arg2[%c0_1, %c0_2], %1 {strides = array<i32>} : memref<128x1024xf32, #tpu.memory_space<vmem>>, vector<128x1024xf32>,
    return
  }
  func.func @transform_0(%arg0: i32) -> (i32, i32) {
    %c0_i32 = arith.constant 0 : i32
    %c0_i32_0 = arith.constant 0 : i32
    return %arg0, %c0_i32 : i32, i32
  }
  func.func @transform_1(%arg0: i32) -> (i32, i32) {
    %c0_i32 = arith.constant 0 : i32
    %c0_i32_0 = arith.constant 0 : i32
    return %arg0, %c0_i32 : i32, i32
  }
}

</mosaic_0001>

<bundles_post_ra>
// kernel: tpu_custom_call.1
= control target key start
LH: loop header
LB: loop body
LE: loop exit
PB: predicated region body
PF: predicated region fallthrough
CT: control target
= control target key end

     0   :  { %6 = vsyncpa [#allocation3], 0  ;;  %s1570_s0 = inlined_call_operand.hbm [shape: f32[512,1024], index: 0, kind: input, shape index: {}]   ;;  %s1571_s1 = inlined_call_operand.hbm [shape: f32[512,1024], index: 1, kind: output, shape index: {}]  }
   0x1   :  { %8 = vsyncpa [#allocation3 + $0x1], 0 }
   0x2   :  { %9 = vsyncpa [#allocation4], 0 }
   0x3   :  { %11 = vsyncpa [#allocation4 + $0x1], 0  ;;  %s1180_s6 = smov 0   ;;  %s1182_s7 = smov 0  }
   0x4   :  { %s1184_s8 = smov 0   ;;  %s1186_s9 = smov 0  }
   0x5 LB: > { %s1201_s10 = sadd.s32 4294967295, %s1164_s9   ;;  %s742_s11 = sadd.s32 4294967294, %s1164_s9   ;;  %s1164_s9 = sphi %s1186_s9, %s1580_s9   ;;  %s1160_s8 = sphi %s1184_s8, %s1579_s8   ;;  %s1156_s7 = sphi %s1182_s7, %s1578_s7   ;;  %s1152_s6 = sphi %s1180_s6, %s1577_s6  }
   0x6   : > { %s1205_s12 = sadd.s32 1, %s1164_s9   ;;  %s24_s13 = sadd.s32 1, %s1160_s8 }
   0x7   : > { %s21_s14 = ssub.s32 %s1164_s9, %s1205_s12  ;;  %p31_p0 = scmp.ne.s32.totalorder %s1160_s8, %s1156_s7 }
   0x8   : > { %p22_p1 = scmp.eq.s32.totalorder %s21_s14, 0  ;;  %p32_p2 = scmp.eq.s32.totalorder %s1164_s9, 0 }
   0x9   : > { %p37_p3 = scmp.ne.s32.totalorder %s1156_s7, %s1152_s6  ;;  %p38_p4 = scmp.eq.s32.totalorder %s1201_s10, 0 }
   0xa   : > { %s1217_s15 = scalar_select %p22_p1, %s1160_s8, %s24_s13  }
   0xb   : > { %p1219_p5 = por %p32_p2, %p31_p0  ;;  %p1223_p6 = por %p38_p4, %p37_p3 }
   0xc   : > { %p61_p7 = scmp.eq.s32.totalorder %s1201_s10, 3  ;;  %p67_p8 = scmp.eq.s32.totalorder %s742_s11, 3 }
   0xd   : > { %p774_p9 = scmp.lt.s32.totalorder %s1164_s9, 4  ;;  %s87_s20 = sand.u32 1, %s1160_s8  }
   0xe   : > { %p1229_p10 = por %p61_p7, %p31_p0  ;;  %p1233_p11 = por %p67_p8, %p37_p3 }
   0xf   : > { %s759_s21 = sshll.u32 %s1164_s9, 10  ;;  %s745_s22 = sshll.u32 %s87_s20, 10 }
  0x10   : > { %s97_s25 = scalar_lea.hbm %s1570_s0, %s759_s21  ;;  %s91_s27 = scalar_lea.vmem [#allocation2], %s745_s22 }
  0x11   : > { %s98_s26 = sshll.u32 %s97_s25, 4  ;;  %s100_s28 = sshll.u32 %s91_s27, 4  ;;  %s99_s26 = int_to_ptr.hbm [resolvable:$true] %s98_s26  ;;  %s101_s28 = int_to_ptr.vmem [resolvable:$true] %s100_s28 }
  0x12   : > { %p1244_p12 = pnand %p774_p9, %p1219_p5  ;;  %p749_p13 = scmp.ge.s32.totalorder %s1164_s9, 1 }
  0x13   : > { %p108_p0 = scmp.lt.s32.totalorder %s1164_s9, 5  ;;  %s88_s30 = scalar_lea.sflag [#allocation3], %s87_s20 }
  0x14   : > { %s1068_s2 = sshra.s32 %s99_s26, 4  ;;  %p1072_p2 = pneg %p1244_p12  ;;  %s1069_s2 = int_to_ptr.hbm [resolvable:$true] %s1068_s2 }
  0x15   : > { %s1070_s3 = scalar_lea.hbm %s1069_s2, 1024  ;;  %s1075_s11 = scalar_lea.hbm %s1570_s0, 4096 }
  0x16   : > { %p1071_p1 = scmp.ne.s32.totalorder %s1069_s2, %s1070_s3  ;;  %p1076_p5 = scmp.lt.s32.totalorder %s1069_s2, %s1570_s0 }
  0x17   : > { %p1077_p7 = scmp.lt.s32.totalorder %s1075_s11, %s1070_s3 }
  0x18   : > { %p1073_p3 = pnand %p1072_p2, %p1071_p1 }
  0x19   : > { %p1078_p8 = por %p1077_p7, %p1076_p5 }
  0x1a   : > { %p1074_p4 = pneg %p1073_p3 }
  0x1c   : > { %p1079_p9 = pnand %p1078_p8, %p1074_p4 }
  0x1e   : > { %1082 = shalt.err (!%p1079_p9)
}
  0x1f   : > { %s1166_s16 = smov 1024   ;;  %s1167_s20 = smov 64  }
  0x20   : > { %769 = dma.hbm_to_vmem [thread:$0]  (!%p1244_p12), %s99_s26, 16384, %s101_s28, %s88_s30, %s1166_s16, %s1166_s16, %s1167_s20  }
  0x21   : > { %p109_p1 = pnand %p749_p13, %p108_p0 }
  0x22   : > { %s1265_s21 = sand.u32 (!%p109_p1), 1, %s1156_s7  }
  0x23   : > { %112 = sbr.rel (%p109_p1) target bundleno = 182 (0xb6), region = 24  ;;  %s750_s22 = sshll.u32 (!%p109_p1), %s1265_s21, 10 }
  0x24   : > { %s115_s23 = scalar_lea.sflag (!%p109_p1), [#allocation3], %s1265_s21  ;;  %s1271_s24 = scalar_lea.vmem (!%p109_p1), [#allocation2], %s750_s22 }
  0x28   : > { %1143 = dma.done.wait (%p1223_p6), %s115_s23, 16384  }
  0x29   : > { %1145 = vsyncadd (%p1223_p6), %s115_s23, 4294950912  ;;  %v140_v0 = vld [vmem:[%s1271_s24] sm:$0xff]  ;;  %v141_v1 = vld [vmem:[%s1271_s24 + $0x8] sm:$0xff]  ;;  %s1293_s17 = scalar_lea.vmem [#allocation5], %s750_s22  ;;  %s761_s25 = sshll.u32 %s1201_s10, 10 }
  0x2a   : > { %v142_v2 = vld [vmem:[%s1271_s24 + $0x10] sm:$0xff]  ;;  %v268_v3 = vmul.f32 1.442695, %v140_v0  ;;  %v270_v4 = vmul.f32 1.442695, %v141_v1  ;;  %v143_v6 = vld [vmem:[%s1271_s24 + $0x18] sm:$0xff]  ;;  %s665_s28 = scalar_lea.hbm %s1571_s1, %s761_s25 }
  0x2b   : > { %v272_v5 = vmul.f32 1.442695, %v142_v2  ;;  %v144_v7 = vld [vmem:[%s1271_s24 + $0x20] sm:$0xff]  ;;  %v145_v8 = vld [vmem:[%s1271_s24 + $0x28] sm:$0xff]  ;;  %v274_v9 = vmul.f32 1.442695, %v143_v6 }
  0x2c   : > { %812 = vpow2.f32 %v268_v3  ;;  %v276_v10 = vmul.f32 1.442695, %v144_v7  ;;  %v278_v11 = vmul.f32 1.442695, %v145_v8  ;;  %v146_v12 = vld [vmem:[%s1271_s24 + $0x30] sm:$0xff]  ;;  %v147_v13 = vld [vmem:[%s1271_s24 + $0x38] sm:$0xff] }
  0x2d   : > { %814 = vpow2.f32 %v270_v4  ;;  %v148_v14 = vld [vmem:[%s1271_s24 + $0x40] sm:$0xff]  ;;  %v280_v15 = vmul.f32 1.442695, %v146_v12  ;;  %v282_v16 = vmul.f32 1.442695, %v147_v13  ;;  %v149_v17 = vld [vmem:[%s1271_s24 + $0x48] sm:$0xff] }
  0x2e   : > { %816 = vpow2.f32 %v272_v5  ;;  %v150_v18 = vld [vmem:[%s1271_s24 + $0x50] sm:$0xff]  ;;  %v284_v19 = vmul.f32 1.442695, %v148_v14  ;;  %v151_v20 = vld [vmem:[%s1271_s24 + $0x58] sm:$0xff]  ;;  %v286_v21 = vmul.f32 1.442695, %v149_v17 }
  0x2f   : > { %818 = vpow2.f32 %v274_v9  ;;  %v152_v22 = vld [vmem:[%s1271_s24 + $0x60] sm:$0xff]  ;;  %v288_v24 = vmul.f32 1.442695, %v150_v18  ;;  %v153_v25 = vld [vmem:[%s1271_s24 + $0x68] sm:$0xff]  ;;  %v290_v27 = vmul.f32 1.442695, %v151_v20 }
  0x30   : > { %820 = vpow2.f32 %v276_v10  ;;  %v154_v28 = vld [vmem:[%s1271_s24 + $0x70] sm:$0xff]  ;;  %v292_v30 = vmul.f32 1.442695, %v152_v22  ;;  %v155_v31 = vld [vmem:[%s1271_s24 + $0x78] sm:$0xff]  ;;  %v294_v33 = vmul.f32 1.442695, %v153_v25 }
  0x31   : > { %822 = vpow2.f32 %v278_v11  ;;  %v156_v34 = vld [vmem:[%s1271_s24 + $0x80] sm:$0xff]  ;;  %v296_v36 = vmul.f32 1.442695, %v154_v28  ;;  %v157_v37 = vld [vmem:[%s1271_s24 + $0x88] sm:$0xff]  ;;  %v298_v39 = vmul.f32 1.442695, %v155_v31 }
  0x32   : > { %v813_v23 = vpop.eup %812  ;;  %824 = vpow2.f32 %v280_v15  ;;  %v158_v40 = vld [vmem:[%s1271_s24 + $0x90] sm:$0xff]  ;;  %v300_v42 = vmul.f32 1.442695, %v156_v34  ;;  %v159_v43 = vld [vmem:[%s1271_s24 + $0x98] sm:$0xff]  ;;  %v302_v45 = vmul.f32 1.442695, %v157_v37 }
  0x33   : > { %v815_v26 = vpop.eup %814  ;;  %524 = vst [vmem:[%s1293_s17] sm:$0xff] %v813_v23  ;;  %826 = vpow2.f32 %v282_v16  ;;  %v160_v46 = vld [vmem:[%s1271_s24 + $0xa0] sm:$0xff]  ;;  %v304_v48 = vmul.f32 1.442695, %v158_v40  ;;  %v161_v49 = vld [vmem:[%s1271_s24 + $0xa8] sm:$0xff]  ;;  %v306_v51 = vmul.f32 1.442695, %v159_v43 }
  0x34   : > { %v817_v29 = vpop.eup %816  ;;  %525 = vst [vmem:[%s1293_s17 + $0x8] sm:$0xff] %v815_v26  ;;  %828 = vpow2.f32 %v284_v19  ;;  %v162_v52 = vld [vmem:[%s1271_s24 + $0xb0] sm:$0xff]  ;;  %v308_v54 = vmul.f32 1.442695, %v160_v46  ;;  %v163_v55 = vld [vmem:[%s1271_s24 + $0xb8] sm:$0xff]  ;;  %v164_v58 = vld [vmem:[%s1271_s24 + $0xc0] sm:$0xff] }
  0x35   : > { %v819_v32 = vpop.eup %818  ;;  %526 = vst [vmem:[%s1293_s17 + $0x10] sm:$0xff] %v817_v29  ;;  %830 = vpow2.f32 %v286_v21  ;;  %v310_v57 = vmul.f32 1.442695, %v161_v49  ;;  %v312_v60 = vmul.f32 1.442695, %v162_v52  ;;  %v165_v61 = vld [vmem:[%s1271_s24 + $0xc8] sm:$0xff] }
  0x36   : > { %v821_v35 = vpop.eup %820  ;;  %527 = vst [vmem:[%s1293_s17 + $0x18] sm:$0xff] %v819_v32  ;;  %832 = vpow2.f32 %v288_v24  ;;  %v314_v63 = vmul.f32 1.442695, %v163_v55  ;;  %v166_v0 = vld [vmem:[%s1271_s24 + $0xd0] sm:$0xff]  ;;  %v316_v2 = vmul.f32 1.442695, %v164_v58 }
  0x37   : > { %v823_v38 = vpop.eup %822  ;;  %528 = vst [vmem:[%s1293_s17 + $0x20] sm:$0xff] %v821_v35  ;;  %834 = vpow2.f32 %v290_v27  ;;  %v167_v3 = vld [vmem:[%s1271_s24 + $0xd8] sm:$0xff]  ;;  %v318_v5 = vmul.f32 1.442695, %v165_v61  ;;  %v168_v6 = vld [vmem:[%s1271_s24 + $0xe0] sm:$0xff]  ;;  %v169_v9 = vld [vmem:[%s1271_s24 + $0xe8] sm:$0xff] }
  0x38   : > { %v825_v41 = vpop.eup %824  ;;  %529 = vst [vmem:[%s1293_s17 + $0x28] sm:$0xff] %v823_v38  ;;  %836 = vpow2.f32 %v292_v30  ;;  %v320_v8 = vmul.f32 1.442695, %v166_v0  ;;  %v322_v11 = vmul.f32 1.442695, %v167_v3  ;;  %v170_v12 = vld [vmem:[%s1271_s24 + $0xf0] sm:$0xff] }
  0x39   : > { %v827_v44 = vpop.eup %826  ;;  %530 = vst [vmem:[%s1293_s17 + $0x30] sm:$0xff] %v825_v41  ;;  %838 = vpow2.f32 %v294_v33  ;;  %v324_v14 = vmul.f32 1.442695, %v168_v6  ;;  %v171_v15 = vld [vmem:[%s1271_s24 + $0xf8] sm:$0xff]  ;;  %v326_v17 = vmul.f32 1.442695, %v169_v9 }
  0x3a   : > { %v829_v47 = vpop.eup %828  ;;  %531 = vst [vmem:[%s1293_s17 + $0x38] sm:$0xff] %v827_v44  ;;  %840 = vpow2.f32 %v296_v36  ;;  %v172_v18 = vld [vmem:[%s1271_s24 + $0x100] sm:$0xff]  ;;  %v328_v20 = vmul.f32 1.442695, %v170_v12  ;;  %v173_v21 = vld [vmem:[%s1271_s24 + $0x108] sm:$0xff]  ;;  %v174_v24 = vld [vmem:[%s1271_s24 + $0x110] sm:$0xff] }
  0x3b   : > { %v831_v50 = vpop.eup %830  ;;  %532 = vst [vmem:[%s1293_s17 + $0x40] sm:$0xff] %v829_v47  ;;  %842 = vpow2.f32 %v298_v39  ;;  %v330_v23 = vmul.f32 1.442695, %v171_v15  ;;  %v332_v26 = vmul.f32 1.442695, %v172_v18  ;;  %v175_v27 = vld [vmem:[%s1271_s24 + $0x118] sm:$0xff] }
  0x3c   : > { %v833_v53 = vpop.eup %832  ;;  %533 = vst [vmem:[%s1293_s17 + $0x48] sm:$0xff] %v831_v50  ;;  %844 = vpow2.f32 %v300_v42  ;;  %v334_v29 = vmul.f32 1.442695, %v173_v21  ;;  %v176_v30 = vld [vmem:[%s1271_s24 + $0x120] sm:$0xff]  ;;  %v336_v32 = vmul.f32 1.442695, %v174_v24 }
  0x3d   : > { %v835_v56 = vpop.eup %834  ;;  %534 = vst [vmem:[%s1293_s17 + $0x50] sm:$0xff] %v833_v53  ;;  %846 = vpow2.f32 %v302_v45  ;;  %v177_v33 = vld [vmem:[%s1271_s24 + $0x128] sm:$0xff]  ;;  %v338_v35 = vmul.f32 1.442695, %v175_v27  ;;  %v178_v36 = vld [vmem:[%s1271_s24 + $0x130] sm:$0xff]  ;;  %v179_v39 = vld [vmem:[%s1271_s24 + $0x138] sm:$0xff] }
  0x3e   : > { %v837_v59 = vpop.eup %836  ;;  %535 = vst [vmem:[%s1293_s17 + $0x58] sm:$0xff] %v835_v56  ;;  %848 = vpow2.f32 %v304_v48  ;;  %v340_v38 = vmul.f32 1.442695, %v176_v30  ;;  %v342_v41 = vmul.f32 1.442695, %v177_v33  ;;  %v180_v42 = vld [vmem:[%s1271_s24 + $0x140] sm:$0xff] }
  0x3f   : > { %v839_v62 = vpop.eup %838  ;;  %536 = vst [vmem:[%s1293_s17 + $0x60] sm:$0xff] %v837_v59  ;;  %850 = vpow2.f32 %v306_v51  ;;  %v344_v44 = vmul.f32 1.442695, %v178_v36  ;;  %v181_v45 = vld [vmem:[%s1271_s24 + $0x148] sm:$0xff]  ;;  %v346_v47 = vmul.f32 1.442695, %v179_v39 }
  0x40   : > { %v841_v1 = vpop.eup %840  ;;  %537 = vst [vmem:[%s1293_s17 + $0x68] sm:$0xff] %v839_v62  ;;  %852 = vpow2.f32 %v308_v54  ;;  %v182_v48 = vld [vmem:[%s1271_s24 + $0x150] sm:$0xff]  ;;  %v348_v50 = vmul.f32 1.442695, %v180_v42  ;;  %v183_v51 = vld [vmem:[%s1271_s24 + $0x158] sm:$0xff]  ;;  %v184_v54 = vld [vmem:[%s1271_s24 + $0x160] sm:$0xff] }
  0x41   : > { %v843_v4 = vpop.eup %842  ;;  %538 = vst [vmem:[%s1293_s17 + $0x70] sm:$0xff] %v841_v1  ;;  %854 = vpow2.f32 %v310_v57  ;;  %v350_v53 = vmul.f32 1.442695, %v181_v45  ;;  %v352_v56 = vmul.f32 1.442695, %v182_v48  ;;  %v185_v57 = vld [vmem:[%s1271_s24 + $0x168] sm:$0xff] }
  0x42   : > { %v845_v7 = vpop.eup %844  ;;  %539 = vst [vmem:[%s1293_s17 + $0x78] sm:$0xff] %v843_v4  ;;  %856 = vpow2.f32 %v312_v60  ;;  %v354_v59 = vmul.f32 1.442695, %v183_v51  ;;  %v186_v60 = vld [vmem:[%s1271_s24 + $0x170] sm:$0xff]  ;;  %v356_v62 = vmul.f32 1.442695, %v184_v54 }
  0x43   : > { %v847_v10 = vpop.eup %846  ;;  %540 = vst [vmem:[%s1293_s17 + $0x80] sm:$0xff] %v845_v7  ;;  %858 = vpow2.f32 %v314_v63  ;;  %v187_v63 = vld [vmem:[%s1271_s24 + $0x178] sm:$0xff]  ;;  %v358_v1 = vmul.f32 1.442695, %v185_v57  ;;  %v360_v4 = vmul.f32 1.442695, %v186_v60 }
  0x44   : > { %v849_v13 = vpop.eup %848  ;;  %541 = vst [vmem:[%s1293_s17 + $0x88] sm:$0xff] %v847_v10  ;;  %860 = vpow2.f32 %v316_v2  ;;  %v188_v2 = vld [vmem:[%s1271_s24 + $0x180] sm:$0xff]  ;;  %v362_v7 = vmul.f32 1.442695, %v187_v63  ;;  %s666_s10 = sshll.u32 %s1293_s17, 4  ;;  %s668_s29 = sshll.u32 %s665_s28, 4  ;;  %s667_s10 = int_to_ptr.vmem [resolvable:$true] %s666_s10  ;;  %s669_s29 = int_to_ptr.hbm [resolvable:$true] %s668_s29 }
  0x45   : > { %v851_v16 = vpop.eup %850  ;;  %542 = vst [vmem:[%s1293_s17 + $0x90] sm:$0xff] %v849_v13  ;;  %862 = vpow2.f32 %v318_v5  ;;  %v189_v5 = vld [vmem:[%s1271_s24 + $0x188] sm:$0xff]  ;;  %v364_v10 = vmul.f32 1.442695, %v188_v2  ;;  %s653_s30 = scalar_lea.sflag [#allocation4], %s1265_s21  ;;  %s1112_s2 = sshra.s32 %s669_s29, 4  ;;  %s1113_s2 = int_to_ptr.hbm [resolvable:$true] %s1112_s2 }
  0x46   : > { %v853_v19 = vpop.eup %852  ;;  %543 = vst [vmem:[%s1293_s17 + $0x98] sm:$0xff] %v851_v16  ;;  %864 = vpow2.f32 %v320_v8  ;;  %v190_v8 = vld [vmem:[%s1271_s24 + $0x190] sm:$0xff]  ;;  %v366_v13 = vmul.f32 1.442695, %v189_v5  ;;  %s1114_s3 = scalar_lea.hbm %s1113_s2, 1024  ;;  %s1118_s11 = scalar_lea.hbm %s1571_s1, 4096 }
  0x47   : > { %v855_v22 = vpop.eup %854  ;;  %544 = vst [vmem:[%s1293_s17 + $0xa0] sm:$0xff] %v853_v19  ;;  %866 = vpow2.f32 %v322_v11  ;;  %v191_v11 = vld [vmem:[%s1271_s24 + $0x198] sm:$0xff]  ;;  %v368_v16 = vmul.f32 1.442695, %v190_v8  ;;  %p1115_p6 = scmp.ne.s32.totalorder %s1113_s2, %s1114_s3  ;;  %p1119_p0 = scmp.lt.s32.totalorder %s1113_s2, %s1571_s1 }
  0x48   : > { %v857_v25 = vpop.eup %856  ;;  %545 = vst [vmem:[%s1293_s17 + $0xa8] sm:$0xff] %v855_v22  ;;  %868 = vpow2.f32 %v324_v14  ;;  %v192_v14 = vld [vmem:[%s1271_s24 + $0x1a0] sm:$0xff]  ;;  %v370_v19 = vmul.f32 1.442695, %v191_v11  ;;  %p1120_p2 = scmp.lt.s32.totalorder %s1118_s11, %s1114_s3 }
  0x49   : > { %v859_v28 = vpop.eup %858  ;;  %546 = vst [vmem:[%s1293_s17 + $0xb0] sm:$0xff] %v857_v25  ;;  %870 = vpow2.f32 %v326_v17  ;;  %v193_v17 = vld [vmem:[%s1271_s24 + $0x1a8] sm:$0xff]  ;;  %v372_v22 = vmul.f32 1.442695, %v192_v14  ;;  %p1116_p12 = pnand %p1115_p6, %p1229_p10 }
  0x4a   : > { %v861_v31 = vpop.eup %860  ;;  %547 = vst [vmem:[%s1293_s17 + $0xb8] sm:$0xff] %v859_v28  ;;  %872 = vpow2.f32 %v328_v20  ;;  %v194_v20 = vld [vmem:[%s1271_s24 + $0x1b0] sm:$0xff]  ;;  %v374_v25 = vmul.f32 1.442695, %v193_v17  ;;  %p1121_p3 = por %p1120_p2, %p1119_p0 }
  0x4b   : > { %v863_v34 = vpop.eup %862  ;;  %548 = vst [vmem:[%s1293_s17 + $0xc0] sm:$0xff] %v861_v31  ;;  %874 = vpow2.f32 %v330_v23  ;;  %v195_v23 = vld [vmem:[%s1271_s24 + $0x1b8] sm:$0xff]  ;;  %v376_v28 = vmul.f32 1.442695, %v194_v20  ;;  %p1117_p13 = pneg %p1116_p12 }
  0x4c   : > { %v865_v37 = vpop.eup %864  ;;  %549 = vst [vmem:[%s1293_s17 + $0xc8] sm:$0xff] %v863_v34  ;;  %876 = vpow2.f32 %v332_v26  ;;  %v196_v26 = vld [vmem:[%s1271_s24 + $0x1c0] sm:$0xff]  ;;  %v378_v31 = vmul.f32 1.442695, %v195_v23 }
  0x4d   : > { %v867_v40 = vpop.eup %866  ;;  %550 = vst [vmem:[%s1293_s17 + $0xd0] sm:$0xff] %v865_v37  ;;  %878 = vpow2.f32 %v334_v29  ;;  %v197_v29 = vld [vmem:[%s1271_s24 + $0x1c8] sm:$0xff]  ;;  %v380_v34 = vmul.f32 1.442695, %v196_v26  ;;  %p1122_p4 = pnand %p1121_p3, %p1117_p13 }
  0x4e   : > { %v869_v43 = vpop.eup %868  ;;  %551 = vst [vmem:[%s1293_s17 + $0xd8] sm:$0xff] %v867_v40  ;;  %880 = vpow2.f32 %v336_v32  ;;  %v198_v32 = vld [vmem:[%s1271_s24 + $0x1d0] sm:$0xff]  ;;  %v382_v37 = vmul.f32 1.442695, %v197_v29 }
  0x4f   : > { %v871_v46 = vpop.eup %870  ;;  %552 = vst [vmem:[%s1293_s17 + $0xe0] sm:$0xff] %v869_v43  ;;  %882 = vpow2.f32 %v338_v35  ;;  %v199_v35 = vld [vmem:[%s1271_s24 + $0x1d8] sm:$0xff]  ;;  %v384_v40 = vmul.f32 1.442695, %v198_v32 }
  0x50   : > { %v873_v49 = vpop.eup %872  ;;  %553 = vst [vmem:[%s1293_s17 + $0xe8] sm:$0xff] %v871_v46  ;;  %884 = vpow2.f32 %v340_v38  ;;  %v200_v38 = vld [vmem:[%s1271_s24 + $0x1e0] sm:$0xff]  ;;  %v386_v43 = vmul.f32 1.442695, %v199_v35 }
  0x51   : > { %v875_v52 = vpop.eup %874  ;;  %554 = vst [vmem:[%s1293_s17 + $0xf0] sm:$0xff] %v873_v49  ;;  %886 = vpow2.f32 %v342_v41  ;;  %v201_v41 = vld [vmem:[%s1271_s24 + $0x1e8] sm:$0xff]  ;;  %v388_v46 = vmul.f32 1.442695, %v200_v38 }
  0x52   : > { %v877_v55 = vpop.eup %876  ;;  %555 = vst [vmem:[%s1293_s17 + $0xf8] sm:$0xff] %v875_v52  ;;  %888 = vpow2.f32 %v344_v44  ;;  %v202_v44 = vld [vmem:[%s1271_s24 + $0x1f0] sm:$0xff]  ;;  %v390_v49 = vmul.f32 1.442695, %v201_v41 }
  0x53   : > { %v879_v58 = vpop.eup %878  ;;  %556 = vst [vmem:[%s1293_s17 + $0x100] sm:$0xff] %v877_v55  ;;  %890 = vpow2.f32 %v346_v47  ;;  %v203_v47 = vld [vmem:[%s1271_s24 + $0x1f8] sm:$0xff]  ;;  %v392_v52 = vmul.f32 1.442695, %v202_v44 }
  0x54   : > { %v881_v61 = vpop.eup %880  ;;  %557 = vst [vmem:[%s1293_s17 + $0x108] sm:$0xff] %v879_v58  ;;  %892 = vpow2.f32 %v348_v50  ;;  %v204_v50 = vld [vmem:[%s1271_s24 + $0x200] sm:$0xff]  ;;  %v394_v55 = vmul.f32 1.442695, %v203_v47 }
  0x55   : > { %v883_v0 = vpop.eup %882  ;;  %558 = vst [vmem:[%s1293_s17 + $0x110] sm:$0xff] %v881_v61  ;;  %894 = vpow2.f32 %v350_v53  ;;  %v205_v53 = vld [vmem:[%s1271_s24 + $0x208] sm:$0xff]  ;;  %v396_v58 = vmul.f32 1.442695, %v204_v50 }
  0x56   : > { %v885_v3 = vpop.eup %884  ;;  %559 = vst [vmem:[%s1293_s17 + $0x118] sm:$0xff] %v883_v0  ;;  %896 = vpow2.f32 %v352_v56  ;;  %v206_v56 = vld [vmem:[%s1271_s24 + $0x210] sm:$0xff]  ;;  %v398_v61 = vmul.f32 1.442695, %v205_v53 }
  0x57   : > { %v887_v6 = vpop.eup %886  ;;  %560 = vst [vmem:[%s1293_s17 + $0x120] sm:$0xff] %v885_v3  ;;  %898 = vpow2.f32 %v354_v59  ;;  %v207_v59 = vld [vmem:[%s1271_s24 + $0x218] sm:$0xff]  ;;  %v400_v0 = vmul.f32 1.442695, %v206_v56 }
  0x58   : > { %v889_v9 = vpop.eup %888  ;;  %561 = vst [vmem:[%s1293_s17 + $0x128] sm:$0xff] %v887_v6  ;;  %900 = vpow2.f32 %v356_v62  ;;  %v208_v62 = vld [vmem:[%s1271_s24 + $0x220] sm:$0xff]  ;;  %v402_v3 = vmul.f32 1.442695, %v207_v59 }
  0x59   : > { %v891_v12 = vpop.eup %890  ;;  %562 = vst [vmem:[%s1293_s17 + $0x130] sm:$0xff] %v889_v9  ;;  %902 = vpow2.f32 %v358_v1  ;;  %v209_v1 = vld [vmem:[%s1271_s24 + $0x228] sm:$0xff]  ;;  %v404_v6 = vmul.f32 1.442695, %v208_v62 }
  0x5a   : > { %v893_v15 = vpop.eup %892  ;;  %563 = vst [vmem:[%s1293_s17 + $0x138] sm:$0xff] %v891_v12  ;;  %904 = vpow2.f32 %v360_v4  ;;  %v210_v4 = vld [vmem:[%s1271_s24 + $0x230] sm:$0xff]  ;;  %v406_v9 = vmul.f32 1.442695, %v209_v1 }
  0x5b   : > { %v895_v18 = vpop.eup %894  ;;  %564 = vst [vmem:[%s1293_s17 + $0x140] sm:$0xff] %v893_v15  ;;  %906 = vpow2.f32 %v362_v7  ;;  %v211_v7 = vld [vmem:[%s1271_s24 + $0x238] sm:$0xff]  ;;  %v408_v12 = vmul.f32 1.442695, %v210_v4 }
  0x5c   : > { %v897_v21 = vpop.eup %896  ;;  %565 = vst [vmem:[%s1293_s17 + $0x148] sm:$0xff] %v895_v18  ;;  %908 = vpow2.f32 %v364_v10  ;;  %v212_v10 = vld [vmem:[%s1271_s24 + $0x240] sm:$0xff]  ;;  %v410_v15 = vmul.f32 1.442695, %v211_v7 }
  0x5d   : > { %v899_v24 = vpop.eup %898  ;;  %566 = vst [vmem:[%s1293_s17 + $0x150] sm:$0xff] %v897_v21  ;;  %910 = vpow2.f32 %v366_v13  ;;  %v213_v13 = vld [vmem:[%s1271_s24 + $0x248] sm:$0xff]  ;;  %v412_v18 = vmul.f32 1.442695, %v212_v10 }
  0x5e   : > { %v901_v27 = vpop.eup %900  ;;  %567 = vst [vmem:[%s1293_s17 + $0x158] sm:$0xff] %v899_v24  ;;  %912 = vpow2.f32 %v368_v16  ;;  %v214_v16 = vld [vmem:[%s1271_s24 + $0x250] sm:$0xff]  ;;  %v414_v21 = vmul.f32 1.442695, %v213_v13 }
  0x5f   : > { %v903_v30 = vpop.eup %902  ;;  %568 = vst [vmem:[%s1293_s17 + $0x160] sm:$0xff] %v901_v27  ;;  %914 = vpow2.f32 %v370_v19  ;;  %v215_v19 = vld [vmem:[%s1271_s24 + $0x258] sm:$0xff]  ;;  %v416_v24 = vmul.f32 1.442695, %v214_v16 }
  0x60   : > { %v905_v33 = vpop.eup %904  ;;  %569 = vst [vmem:[%s1293_s17 + $0x168] sm:$0xff] %v903_v30  ;;  %916 = vpow2.f32 %v372_v22  ;;  %v216_v22 = vld [vmem:[%s1271_s24 + $0x260] sm:$0xff]  ;;  %v418_v27 = vmul.f32 1.442695, %v215_v19 }
  0x61   : > { %v907_v36 = vpop.eup %906  ;;  %570 = vst [vmem:[%s1293_s17 + $0x170] sm:$0xff] %v905_v33  ;;  %918 = vpow2.f32 %v374_v25  ;;  %v217_v25 = vld [vmem:[%s1271_s24 + $0x268] sm:$0xff]  ;;  %v420_v30 = vmul.f32 1.442695, %v216_v22 }
  0x62   : > { %v909_v39 = vpop.eup %908  ;;  %571 = vst [vmem:[%s1293_s17 + $0x178] sm:$0xff] %v907_v36  ;;  %920 = vpow2.f32 %v376_v28  ;;  %v218_v28 = vld [vmem:[%s1271_s24 + $0x270] sm:$0xff]  ;;  %v422_v33 = vmul.f32 1.442695, %v217_v25 }
  0x63   : > { %v911_v42 = vpop.eup %910  ;;  %572 = vst [vmem:[%s1293_s17 + $0x180] sm:$0xff] %v909_v39  ;;  %922 = vpow2.f32 %v378_v31  ;;  %v219_v31 = vld [vmem:[%s1271_s24 + $0x278] sm:$0xff]  ;;  %v424_v36 = vmul.f32 1.442695, %v218_v28 }
  0x64   : > { %v913_v45 = vpop.eup %912  ;;  %573 = vst [vmem:[%s1293_s17 + $0x188] sm:$0xff] %v911_v42  ;;  %924 = vpow2.f32 %v380_v34  ;;  %v220_v34 = vld [vmem:[%s1271_s24 + $0x280] sm:$0xff]  ;;  %v426_v39 = vmul.f32 1.442695, %v219_v31 }
  0x65   : > { %v915_v48 = vpop.eup %914  ;;  %574 = vst [vmem:[%s1293_s17 + $0x190] sm:$0xff] %v913_v45  ;;  %926 = vpow2.f32 %v382_v37  ;;  %v221_v37 = vld [vmem:[%s1271_s24 + $0x288] sm:$0xff]  ;;  %v428_v42 = vmul.f32 1.442695, %v220_v34 }
  0x66   : > { %v917_v51 = vpop.eup %916  ;;  %575 = vst [vmem:[%s1293_s17 + $0x198] sm:$0xff] %v915_v48  ;;  %928 = vpow2.f32 %v384_v40  ;;  %v222_v40 = vld [vmem:[%s1271_s24 + $0x290] sm:$0xff]  ;;  %v430_v45 = vmul.f32 1.442695, %v221_v37 }
  0x67   : > { %v919_v54 = vpop.eup %918  ;;  %576 = vst [vmem:[%s1293_s17 + $0x1a0] sm:$0xff] %v917_v51  ;;  %930 = vpow2.f32 %v386_v43  ;;  %v223_v43 = vld [vmem:[%s1271_s24 + $0x298] sm:$0xff]  ;;  %v432_v48 = vmul.f32 1.442695, %v222_v40 }
  0x68   : > { %v921_v57 = vpop.eup %920  ;;  %577 = vst [vmem:[%s1293_s17 + $0x1a8] sm:$0xff] %v919_v54  ;;  %932 = vpow2.f32 %v388_v46  ;;  %v224_v46 = vld [vmem:[%s1271_s24 + $0x2a0] sm:$0xff]  ;;  %v434_v51 = vmul.f32 1.442695, %v223_v43 }
  0x69   : > { %v923_v60 = vpop.eup %922  ;;  %578 = vst [vmem:[%s1293_s17 + $0x1b0] sm:$0xff] %v921_v57  ;;  %934 = vpow2.f32 %v390_v49  ;;  %v225_v49 = vld [vmem:[%s1271_s24 + $0x2a8] sm:$0xff]  ;;  %v436_v54 = vmul.f32 1.442695, %v224_v46 }
  0x6a   : > { %v925_v63 = vpop.eup %924  ;;  %579 = vst [vmem:[%s1293_s17 + $0x1b8] sm:$0xff] %v923_v60  ;;  %936 = vpow2.f32 %v392_v52  ;;  %v226_v52 = vld [vmem:[%s1271_s24 + $0x2b0] sm:$0xff]  ;;  %v438_v57 = vmul.f32 1.442695, %v225_v49 }
  0x6b   : > { %v927_v2 = vpop.eup %926  ;;  %580 = vst [vmem:[%s1293_s17 + $0x1c0] sm:$0xff] %v925_v63  ;;  %938 = vpow2.f32 %v394_v55  ;;  %v227_v55 = vld [vmem:[%s1271_s24 + $0x2b8] sm:$0xff]  ;;  %v440_v60 = vmul.f32 1.442695, %v226_v52 }
  0x6c   : > { %v929_v5 = vpop.eup %928  ;;  %581 = vst [vmem:[%s1293_s17 + $0x1c8] sm:$0xff] %v927_v2  ;;  %940 = vpow2.f32 %v396_v58  ;;  %v228_v58 = vld [vmem:[%s1271_s24 + $0x2c0] sm:$0xff]  ;;  %v442_v63 = vmul.f32 1.442695, %v227_v55 }
  0x6d   : > { %v931_v8 = vpop.eup %930  ;;  %582 = vst [vmem:[%s1293_s17 + $0x1d0] sm:$0xff] %v929_v5  ;;  %942 = vpow2.f32 %v398_v61  ;;  %v229_v61 = vld [vmem:[%s1271_s24 + $0x2c8] sm:$0xff]  ;;  %v444_v2 = vmul.f32 1.442695, %v228_v58 }
  0x6e   : > { %v933_v11 = vpop.eup %932  ;;  %583 = vst [vmem:[%s1293_s17 + $0x1d8] sm:$0xff] %v931_v8  ;;  %944 = vpow2.f32 %v400_v0  ;;  %v230_v0 = vld [vmem:[%s1271_s24 + $0x2d0] sm:$0xff]  ;;  %v446_v5 = vmul.f32 1.442695, %v229_v61 }
  0x6f   : > { %v935_v14 = vpop.eup %934  ;;  %584 = vst [vmem:[%s1293_s17 + $0x1e0] sm:$0xff] %v933_v11  ;;  %946 = vpow2.f32 %v402_v3  ;;  %v231_v3 = vld [vmem:[%s1271_s24 + $0x2d8] sm:$0xff]  ;;  %v448_v8 = vmul.f32 1.442695, %v230_v0 }
  0x70   : > { %v937_v17 = vpop.eup %936  ;;  %585 = vst [vmem:[%s1293_s17 + $0x1e8] sm:$0xff] %v935_v14  ;;  %948 = vpow2.f32 %v404_v6  ;;  %v232_v6 = vld [vmem:[%s1271_s24 + $0x2e0] sm:$0xff]  ;;  %v450_v11 = vmul.f32 1.442695, %v231_v3 }
  0x71   : > { %v939_v20 = vpop.eup %938  ;;  %586 = vst [vmem:[%s1293_s17 + $0x1f0] sm:$0xff] %v937_v17  ;;  %950 = vpow2.f32 %v406_v9  ;;  %v233_v9 = vld [vmem:[%s1271_s24 + $0x2e8] sm:$0xff]  ;;  %v452_v14 = vmul.f32 1.442695, %v232_v6 }
  0x72   : > { %v941_v23 = vpop.eup %940  ;;  %587 = vst [vmem:[%s1293_s17 + $0x1f8] sm:$0xff] %v939_v20  ;;  %952 = vpow2.f32 %v408_v12  ;;  %v234_v12 = vld [vmem:[%s1271_s24 + $0x2f0] sm:$0xff]  ;;  %v454_v17 = vmul.f32 1.442695, %v233_v9 }
  0x73   : > { %v943_v26 = vpop.eup %942  ;;  %588 = vst [vmem:[%s1293_s17 + $0x200] sm:$0xff] %v941_v23  ;;  %954 = vpow2.f32 %v410_v15  ;;  %v235_v15 = vld [vmem:[%s1271_s24 + $0x2f8] sm:$0xff]  ;;  %v456_v20 = vmul.f32 1.442695, %v234_v12 }
  0x74   : > { %v945_v29 = vpop.eup %944  ;;  %589 = vst [vmem:[%s1293_s17 + $0x208] sm:$0xff] %v943_v26  ;;  %956 = vpow2.f32 %v412_v18  ;;  %v236_v18 = vld [vmem:[%s1271_s24 + $0x300] sm:$0xff]  ;;  %v458_v23 = vmul.f32 1.442695, %v235_v15 }
  0x75   : > { %v947_v32 = vpop.eup %946  ;;  %590 = vst [vmem:[%s1293_s17 + $0x210] sm:$0xff] %v945_v29  ;;  %958 = vpow2.f32 %v414_v21  ;;  %v237_v21 = vld [vmem:[%s1271_s24 + $0x308] sm:$0xff]  ;;  %v460_v26 = vmul.f32 1.442695, %v236_v18 }
  0x76   : > { %v949_v35 = vpop.eup %948  ;;  %591 = vst [vmem:[%s1293_s17 + $0x218] sm:$0xff] %v947_v32  ;;  %960 = vpow2.f32 %v416_v24  ;;  %v238_v24 = vld [vmem:[%s1271_s24 + $0x310] sm:$0xff]  ;;  %v462_v29 = vmul.f32 1.442695, %v237_v21 }
  0x77   : > { %v951_v38 = vpop.eup %950  ;;  %592 = vst [vmem:[%s1293_s17 + $0x220] sm:$0xff] %v949_v35  ;;  %962 = vpow2.f32 %v418_v27  ;;  %v239_v27 = vld [vmem:[%s1271_s24 + $0x318] sm:$0xff]  ;;  %v464_v32 = vmul.f32 1.442695, %v238_v24 }
  0x78   : > { %v953_v41 = vpop.eup %952  ;;  %593 = vst [vmem:[%s1293_s17 + $0x228] sm:$0xff] %v951_v38  ;;  %964 = vpow2.f32 %v420_v30  ;;  %v240_v30 = vld [vmem:[%s1271_s24 + $0x320] sm:$0xff]  ;;  %v466_v35 = vmul.f32 1.442695, %v239_v27 }
  0x79   : > { %v955_v44 = vpop.eup %954  ;;  %594 = vst [vmem:[%s1293_s17 + $0x230] sm:$0xff] %v953_v41  ;;  %966 = vpow2.f32 %v422_v33  ;;  %v241_v33 = vld [vmem:[%s1271_s24 + $0x328] sm:$0xff]  ;;  %v468_v38 = vmul.f32 1.442695, %v240_v30 }
  0x7a   : > { %v957_v47 = vpop.eup %956  ;;  %595 = vst [vmem:[%s1293_s17 + $0x238] sm:$0xff] %v955_v44  ;;  %968 = vpow2.f32 %v424_v36  ;;  %v242_v36 = vld [vmem:[%s1271_s24 + $0x330] sm:$0xff]  ;;  %v470_v41 = vmul.f32 1.442695, %v241_v33 }
  0x7b   : > { %v959_v50 = vpop.eup %958  ;;  %596 = vst [vmem:[%s1293_s17 + $0x240] sm:$0xff] %v957_v47  ;;  %970 = vpow2.f32 %v426_v39  ;;  %v243_v39 = vld [vmem:[%s1271_s24 + $0x338] sm:$0xff]  ;;  %v472_v44 = vmul.f32 1.442695, %v242_v36 }
  0x7c   : > { %v961_v53 = vpop.eup %960  ;;  %597 = vst [vmem:[%s1293_s17 + $0x248] sm:$0xff] %v959_v50  ;;  %972 = vpow2.f32 %v428_v42  ;;  %v244_v42 = vld [vmem:[%s1271_s24 + $0x340] sm:$0xff]  ;;  %v474_v47 = vmul.f32 1.442695, %v243_v39 }
  0x7d   : > { %v963_v56 = vpop.eup %962  ;;  %598 = vst [vmem:[%s1293_s17 + $0x250] sm:$0xff] %v961_v53  ;;  %974 = vpow2.f32 %v430_v45  ;;  %v245_v45 = vld [vmem:[%s1271_s24 + $0x348] sm:$0xff]  ;;  %v476_v50 = vmul.f32 1.442695, %v244_v42 }
  0x7e   : > { %v965_v59 = vpop.eup %964  ;;  %599 = vst [vmem:[%s1293_s17 + $0x258] sm:$0xff] %v963_v56  ;;  %976 = vpow2.f32 %v432_v48  ;;  %v246_v48 = vld [vmem:[%s1271_s24 + $0x350] sm:$0xff]  ;;  %v478_v53 = vmul.f32 1.442695, %v245_v45 }
  0x7f   : > { %v967_v62 = vpop.eup %966  ;;  %600 = vst [vmem:[%s1293_s17 + $0x260] sm:$0xff] %v965_v59  ;;  %978 = vpow2.f32 %v434_v51  ;;  %v247_v51 = vld [vmem:[%s1271_s24 + $0x358] sm:$0xff]  ;;  %v480_v56 = vmul.f32 1.442695, %v246_v48 }
  0x80   : > { %v969_v1 = vpop.eup %968  ;;  %601 = vst [vmem:[%s1293_s17 + $0x268] sm:$0xff] %v967_v62  ;;  %980 = vpow2.f32 %v436_v54  ;;  %v248_v54 = vld [vmem:[%s1271_s24 + $0x360] sm:$0xff]  ;;  %v482_v59 = vmul.f32 1.442695, %v247_v51 }
  0x81   : > { %v971_v4 = vpop.eup %970  ;;  %602 = vst [vmem:[%s1293_s17 + $0x270] sm:$0xff] %v969_v1  ;;  %982 = vpow2.f32 %v438_v57  ;;  %v249_v57 = vld [vmem:[%s1271_s24 + $0x368] sm:$0xff]  ;;  %v484_v62 = vmul.f32 1.442695, %v248_v54 }
  0x82   : > { %v973_v7 = vpop.eup %972  ;;  %603 = vst [vmem:[%s1293_s17 + $0x278] sm:$0xff] %v971_v4  ;;  %984 = vpow2.f32 %v440_v60  ;;  %v250_v60 = vld [vmem:[%s1271_s24 + $0x370] sm:$0xff]  ;;  %v486_v1 = vmul.f32 1.442695, %v249_v57 }
  0x83   : > { %v975_v10 = vpop.eup %974  ;;  %604 = vst [vmem:[%s1293_s17 + $0x280] sm:$0xff] %v973_v7  ;;  %986 = vpow2.f32 %v442_v63  ;;  %v251_v63 = vld [vmem:[%s1271_s24 + $0x378] sm:$0xff]  ;;  %v488_v4 = vmul.f32 1.442695, %v250_v60 }
  0x84   : > { %v977_v13 = vpop.eup %976  ;;  %605 = vst [vmem:[%s1293_s17 + $0x288] sm:$0xff] %v975_v10  ;;  %988 = vpow2.f32 %v444_v2  ;;  %v252_v2 = vld [vmem:[%s1271_s24 + $0x380] sm:$0xff]  ;;  %v490_v7 = vmul.f32 1.442695, %v251_v63 }
  0x85   : > { %v979_v16 = vpop.eup %978  ;;  %606 = vst [vmem:[%s1293_s17 + $0x290] sm:$0xff] %v977_v13  ;;  %990 = vpow2.f32 %v446_v5  ;;  %v253_v5 = vld [vmem:[%s1271_s24 + $0x388] sm:$0xff]  ;;  %v492_v10 = vmul.f32 1.442695, %v252_v2 }
  0x86   : > { %v981_v19 = vpop.eup %980  ;;  %607 = vst [vmem:[%s1293_s17 + $0x298] sm:$0xff] %v979_v16  ;;  %992 = vpow2.f32 %v448_v8  ;;  %v254_v8 = vld [vmem:[%s1271_s24 + $0x390] sm:$0xff]  ;;  %v494_v13 = vmul.f32 1.442695, %v253_v5 }
  0x87   : > { %v983_v22 = vpop.eup %982  ;;  %608 = vst [vmem:[%s1293_s17 + $0x2a0] sm:$0xff] %v981_v19  ;;  %994 = vpow2.f32 %v450_v11  ;;  %v255_v11 = vld [vmem:[%s1271_s24 + $0x398] sm:$0xff]  ;;  %v496_v16 = vmul.f32 1.442695, %v254_v8 }
  0x88   : > { %v985_v25 = vpop.eup %984  ;;  %609 = vst [vmem:[%s1293_s17 + $0x2a8] sm:$0xff] %v983_v22  ;;  %996 = vpow2.f32 %v452_v14  ;;  %v256_v14 = vld [vmem:[%s1271_s24 + $0x3a0] sm:$0xff]  ;;  %v498_v19 = vmul.f32 1.442695, %v255_v11 }
  0x89   : > { %v987_v28 = vpop.eup %986  ;;  %610 = vst [vmem:[%s1293_s17 + $0x2b0] sm:$0xff] %v985_v25  ;;  %998 = vpow2.f32 %v454_v17  ;;  %v257_v17 = vld [vmem:[%s1271_s24 + $0x3a8] sm:$0xff]  ;;  %v500_v22 = vmul.f32 1.442695, %v256_v14 }
  0x8a   : > { %v989_v31 = vpop.eup %988  ;;  %611 = vst [vmem:[%s1293_s17 + $0x2b8] sm:$0xff] %v987_v28  ;;  %1000 = vpow2.f32 %v456_v20  ;;  %v258_v20 = vld [vmem:[%s1271_s24 + $0x3b0] sm:$0xff]  ;;  %v502_v25 = vmul.f32 1.442695, %v257_v17 }
  0x8b   : > { %v991_v34 = vpop.eup %990  ;;  %612 = vst [vmem:[%s1293_s17 + $0x2c0] sm:$0xff] %v989_v31  ;;  %1002 = vpow2.f32 %v458_v23  ;;  %v259_v23 = vld [vmem:[%s1271_s24 + $0x3b8] sm:$0xff]  ;;  %v504_v28 = vmul.f32 1.442695, %v258_v20 }
  0x8c   : > { %v993_v37 = vpop.eup %992  ;;  %613 = vst [vmem:[%s1293_s17 + $0x2c8] sm:$0xff] %v991_v34  ;;  %1004 = vpow2.f32 %v460_v26  ;;  %v260_v26 = vld [vmem:[%s1271_s24 + $0x3c0] sm:$0xff]  ;;  %v506_v31 = vmul.f32 1.442695, %v259_v23 }
  0x8d   : > { %v995_v40 = vpop.eup %994  ;;  %614 = vst [vmem:[%s1293_s17 + $0x2d0] sm:$0xff] %v993_v37  ;;  %1006 = vpow2.f32 %v462_v29  ;;  %v261_v29 = vld [vmem:[%s1271_s24 + $0x3c8] sm:$0xff]  ;;  %v508_v34 = vmul.f32 1.442695, %v260_v26 }
  0x8e   : > { %v997_v43 = vpop.eup %996  ;;  %615 = vst [vmem:[%s1293_s17 + $0x2d8] sm:$0xff] %v995_v40  ;;  %1008 = vpow2.f32 %v464_v32  ;;  %v262_v32 = vld [vmem:[%s1271_s24 + $0x3d0] sm:$0xff]  ;;  %v510_v37 = vmul.f32 1.442695, %v261_v29 }
  0x8f   : > { %v999_v46 = vpop.eup %998  ;;  %616 = vst [vmem:[%s1293_s17 + $0x2e0] sm:$0xff] %v997_v43  ;;  %1010 = vpow2.f32 %v466_v35  ;;  %v263_v35 = vld [vmem:[%s1271_s24 + $0x3d8] sm:$0xff]  ;;  %v512_v40 = vmul.f32 1.442695, %v262_v32 }
  0x90   : > { %v1001_v49 = vpop.eup %1000  ;;  %617 = vst [vmem:[%s1293_s17 + $0x2e8] sm:$0xff] %v999_v46  ;;  %1012 = vpow2.f32 %v468_v38  ;;  %v264_v38 = vld [vmem:[%s1271_s24 + $0x3e0] sm:$0xff]  ;;  %v514_v43 = vmul.f32 1.442695, %v263_v35 }
  0x91   : > { %v1003_v52 = vpop.eup %1002  ;;  %618 = vst [vmem:[%s1293_s17 + $0x2f0] sm:$0xff] %v1001_v49  ;;  %1014 = vpow2.f32 %v470_v41  ;;  %v265_v41 = vld [vmem:[%s1271_s24 + $0x3e8] sm:$0xff]  ;;  %v516_v46 = vmul.f32 1.442695, %v264_v38 }
  0x92   : > { %v1005_v55 = vpop.eup %1004  ;;  %619 = vst [vmem:[%s1293_s17 + $0x2f8] sm:$0xff] %v1003_v52  ;;  %1016 = vpow2.f32 %v472_v44  ;;  %v266_v44 = vld [vmem:[%s1271_s24 + $0x3f0] sm:$0xff]  ;;  %v518_v49 = vmul.f32 1.442695, %v265_v41 }
  0x93   : > { %v1007_v58 = vpop.eup %1006  ;;  %620 = vst [vmem:[%s1293_s17 + $0x300] sm:$0xff] %v1005_v55  ;;  %1018 = vpow2.f32 %v474_v47  ;;  %v267_v47 = vld [vmem:[%s1271_s24 + $0x3f8] sm:$0xff]  ;;  %v520_v51 = vmul.f32 1.442695, %v266_v44 }
  0x94   : > { %v1009_v61 = vpop.eup %1008  ;;  %621 = vst [vmem:[%s1293_s17 + $0x308] sm:$0xff] %v1007_v58  ;;  %1020 = vpow2.f32 %v476_v50 }
  0x95   : > { %v1011_v0 = vpop.eup %1010  ;;  %622 = vst [vmem:[%s1293_s17 + $0x310] sm:$0xff] %v1009_v61  ;;  %1022 = vpow2.f32 %v478_v53  ;;  %v522_v53 = vmul.f32 1.442695, %v267_v47 }
  0x96   : > { %v1013_v3 = vpop.eup %1012  ;;  %623 = vst [vmem:[%s1293_s17 + $0x318] sm:$0xff] %v1011_v0  ;;  %1024 = vpow2.f32 %v480_v56 }
  0x97   : > { %v1015_v6 = vpop.eup %1014  ;;  %624 = vst [vmem:[%s1293_s17 + $0x320] sm:$0xff] %v1013_v3  ;;  %1026 = vpow2.f32 %v482_v59 }
  0x98   : > { %v1017_v9 = vpop.eup %1016  ;;  %625 = vst [vmem:[%s1293_s17 + $0x328] sm:$0xff] %v1015_v6  ;;  %1028 = vpow2.f32 %v484_v62 }
  0x99   : > { %v1019_v12 = vpop.eup %1018  ;;  %626 = vst [vmem:[%s1293_s17 + $0x330] sm:$0xff] %v1017_v9  ;;  %1030 = vpow2.f32 %v486_v1 }
  0x9a   : > { %v1021_v15 = vpop.eup %1020  ;;  %627 = vst [vmem:[%s1293_s17 + $0x338] sm:$0xff] %v1019_v12  ;;  %1032 = vpow2.f32 %v488_v4 }
  0x9b   : > { %v1023_v18 = vpop.eup %1022  ;;  %628 = vst [vmem:[%s1293_s17 + $0x340] sm:$0xff] %v1021_v15  ;;  %1034 = vpow2.f32 %v490_v7 }
  0x9c   : > { %v1025_v21 = vpop.eup %1024  ;;  %629 = vst [vmem:[%s1293_s17 + $0x348] sm:$0xff] %v1023_v18  ;;  %1036 = vpow2.f32 %v492_v10 }
  0x9d   : > { %v1027_v24 = vpop.eup %1026  ;;  %630 = vst [vmem:[%s1293_s17 + $0x350] sm:$0xff] %v1025_v21  ;;  %1038 = vpow2.f32 %v494_v13 }
  0x9e   : > { %v1029_v27 = vpop.eup %1028  ;;  %631 = vst [vmem:[%s1293_s17 + $0x358] sm:$0xff] %v1027_v24  ;;  %1040 = vpow2.f32 %v496_v16 }
  0x9f   : > { %v1031_v30 = vpop.eup %1030  ;;  %632 = vst [vmem:[%s1293_s17 + $0x360] sm:$0xff] %v1029_v27  ;;  %1042 = vpow2.f32 %v498_v19 }
  0xa0   : > { %v1033_v33 = vpop.eup %1032  ;;  %633 = vst [vmem:[%s1293_s17 + $0x368] sm:$0xff] %v1031_v30  ;;  %1044 = vpow2.f32 %v500_v22 }
  0xa1   : > { %v1035_v36 = vpop.eup %1034  ;;  %634 = vst [vmem:[%s1293_s17 + $0x370] sm:$0xff] %v1033_v33  ;;  %1046 = vpow2.f32 %v502_v25 }
  0xa2   : > { %v1037_v39 = vpop.eup %1036  ;;  %635 = vst [vmem:[%s1293_s17 + $0x378] sm:$0xff] %v1035_v36  ;;  %1048 = vpow2.f32 %v504_v28 }
  0xa3   : > { %v1039_v42 = vpop.eup %1038  ;;  %636 = vst [vmem:[%s1293_s17 + $0x380] sm:$0xff] %v1037_v39  ;;  %1050 = vpow2.f32 %v506_v31 }
  0xa4   : > { %v1041_v45 = vpop.eup %1040  ;;  %637 = vst [vmem:[%s1293_s17 + $0x388] sm:$0xff] %v1039_v42  ;;  %1052 = vpow2.f32 %v508_v34 }
  0xa5   : > { %v1043_v48 = vpop.eup %1042  ;;  %638 = vst [vmem:[%s1293_s17 + $0x390] sm:$0xff] %v1041_v45  ;;  %1054 = vpow2.f32 %v510_v37 }
  0xa6   : > { %v1045_v50 = vpop.eup %1044  ;;  %639 = vst [vmem:[%s1293_s17 + $0x398] sm:$0xff] %v1043_v48  ;;  %1056 = vpow2.f32 %v512_v40 }
  0xa7   : > { %v1047_v52 = vpop.eup %1046  ;;  %640 = vst [vmem:[%s1293_s17 + $0x3a0] sm:$0xff] %v1045_v50  ;;  %1058 = vpow2.f32 %v514_v43 }
  0xa8   : > { %v1049_v54 = vpop.eup %1048  ;;  %641 = vst [vmem:[%s1293_s17 + $0x3a8] sm:$0xff] %v1047_v52  ;;  %1060 = vpow2.f32 %v516_v46 }
  0xa9   : > { %v1051_v55 = vpop.eup %1050  ;;  %642 = vst [vmem:[%s1293_s17 + $0x3b0] sm:$0xff] %v1049_v54  ;;  %1062 = vpow2.f32 %v518_v49 }
  0xaa   : > { %v1053_v56 = vpop.eup %1052  ;;  %643 = vst [vmem:[%s1293_s17 + $0x3b8] sm:$0xff] %v1051_v55  ;;  %1064 = vpow2.f32 %v520_v51 }
  0xab   : > { %v1055_v57 = vpop.eup %1054  ;;  %644 = vst [vmem:[%s1293_s17 + $0x3c0] sm:$0xff] %v1053_v56  ;;  %1066 = vpow2.f32 %v522_v53 }
  0xac   : > { %v1057_v58 = vpop.eup %1056  ;;  %645 = vst [vmem:[%s1293_s17 + $0x3c8] sm:$0xff] %v1055_v57 }
  0xad   : > { %v1059_v59 = vpop.eup %1058  ;;  %646 = vst [vmem:[%s1293_s17 + $0x3d0] sm:$0xff] %v1057_v58 }
  0xae   : > { %v1061_v60 = vpop.eup %1060  ;;  %647 = vst [vmem:[%s1293_s17 + $0x3d8] sm:$0xff] %v1059_v59 }
  0xaf   : > { %v1063_v61 = vpop.eup %1062  ;;  %648 = vst [vmem:[%s1293_s17 + $0x3e0] sm:$0xff] %v1061_v60 }
  0xb0   : > { %v1065_v62 = vpop.eup %1064  ;;  %649 = vst [vmem:[%s1293_s17 + $0x3e8] sm:$0xff] %v1063_v61 }
  0xb1   : > { %v1067_v63 = vpop.eup %1066  ;;  %650 = vst [vmem:[%s1293_s17 + $0x3f0] sm:$0xff] %v1065_v62 }
  0xb2   : > { %651 = vst [vmem:[%s1293_s17 + $0x3f8] sm:$0xff] %v1067_v63 }
  0xb3   : > { %1125 = shalt.err (!%p1122_p4)
}
  0xb4   : > { %s1168_s16 = smov 1024   ;;  %s1169_s20 = smov 64  }
  0xb5   : > { %764 = dma.vmem_to_hbm [thread:$0]  (%p1229_p10), %s667_s10, 16384, %s669_s29, %s653_s30, %s1168_s16, %s1168_s16, %s1169_s20  }
  0xb6 PF: > { %p775_p5 = scmp.ge.s32.totalorder %s1164_s9, 2  ;;  %s683_s21 = sand.u32 1, %s1152_s6  }
  0xb7   : > { %s684_s22 = scalar_lea.sflag [#allocation4], %s683_s21 }
  0xb8   : > { %p771_p7 = pnand %p775_p5, %p1233_p11 }
  0xba   : > { %p772_p8 = pneg %p771_p7 }
  0xbc   : > { %1147 = dma.done.wait (%p772_p8), %s684_s22, 16384  }
  0xbd   : > { %1149 = vsyncadd (%p772_p8), %s684_s22, 4294950912  ;;  %p14_p9 = scmp.ge.s32.totalorder %s1205_s12, 6   ;;  %s1577_s6 = smov %s1156_s7 }
  0xbe   : > { %s1578_s7 = smov %s1160_s8  ;;  %s1579_s8 = smov %s1217_s15 }
  0xbf   : > { %s1580_s9 = smov %s1205_s12  ;;  %16 = sbr.rel (!%p14_p9) target bundleno = 5 (0x5), region = 69 }
  0xc4   :  { %690 = vsyncpa [#allocation3], 1 }
  0xc5   :  { %692 = vsyncpa [#allocation3 + $0x1], 1 }
  0xc6   :  { %693 = vsyncpa [#allocation4], 1 }
  0xc7   :  { %695 = vsyncpa [#allocation4 + $0x1], 1 }

</bundles_post_ra>
